<compile_context>
chip_gen: v7x
topology: tpu7x:2x2x1
jax: 0.10.0
libtpu: 0.0.40
codegen_flags: <defaults>
</compile_context>

<pallas_src>
import functools
import math

import jax
import jax.numpy as jnp
from jax import lax
from jax.experimental import pallas as pl
from jax.experimental.pallas import tpu as pltpu


# ----------------------------------------------------------------------------
# Fused kernel: projections + layernorms + bidirectional cross-attn + out-proj
# ----------------------------------------------------------------------------

def _layernorm(x, gamma, beta):
    # Row-wise layer norm over the feature (lane) axis, f32 math.
    mean = jnp.mean(x, axis=-1, keepdims=True)
    var = jnp.mean((x - mean) * (x - mean), axis=-1, keepdims=True)
    return (x - mean) * lax.rsqrt(var + 1e-5) * gamma + beta


def _softmax_attend(q, k, v, scale):
    # Scores: contract on the last dims so the MXU consumes K without a
    # materialized transpose / XLU relayout.
    dn = (((1,), (1,)), ((), ()))
    s = lax.dot_general(q, k, dn, preferred_element_type=jnp.float32) * scale
    m = jnp.max(s, axis=-1, keepdims=True)
    p = jnp.exp(s - m)
    l = jnp.sum(p, axis=-1, keepdims=True)
    out = jnp.dot(p, v, preferred_element_type=jnp.float32)
    return out * pl.reciprocal(l, approx=True)


def _fused_percep_kernel(v_ref, a_ref, wv_ref, wa_ref, wo_ref, vec_ref, o_ref,
                         *, d_model, scale):
    d = d_model
    bf16 = jnp.bfloat16
    f32 = jnp.float32

    # ---- packed small parameters (static, zero-cost slices) -----------------
    # rows: [b_v, g_v, bn_v, b_a, g_a, bn_a, b_o, pad]
    b_v = vec_ref[0:1, :d]
    g_v = vec_ref[1:2, :d]
    bn_v = vec_ref[2:3, :d]
    b_a = vec_ref[3:4, :d]
    g_a = vec_ref[4:5, :d]
    bn_a = vec_ref[5:6, :d]
    b_o = vec_ref[6:7, :]

    # ---- modality projections (Conv1d k=1 == linear over features) ----------
    # bf16 MXU operands, f32 accumulation; bias add in f32 on the VPU.
    v = jnp.dot(v_ref[...].astype(bf16), wv_ref[...],
                preferred_element_type=f32) + b_v
    a = jnp.dot(a_ref[...].astype(bf16), wa_ref[...],
                preferred_element_type=f32) + b_a

    # ---- layernorm epilogue (f32 element-wise math, v5e-safe) ----------------
    v = _layernorm(v, g_v, bn_v)
    a = _layernorm(a, g_a, bn_a)

    # ---- bidirectional cross-modal attention (both directions, one body) ----
    h_va = _softmax_attend(v, a, a, scale)   # video queries audio
    h_av = _softmax_attend(a, v, v, scale)   # audio queries video

    # ---- output projection: block matmul replaces concat([h_va, h_av]) ------
    # concat([h_va, h_av]) @ W_o == h_va @ W_o[:d] + h_av @ W_o[d:]
    # W_o halves are static sublane views of the single resident (2d,2d) tile.
    wo_top = wo_ref[0:d, :]
    wo_bot = wo_ref[d:2 * d, :]
    out = (jnp.dot(h_va.astype(bf16), wo_top, preferred_element_type=f32)
           + jnp.dot(h_av.astype(bf16), wo_bot, preferred_element_type=f32)
           + b_o)
    o_ref[...] = out.astype(o_ref.dtype)     # (S, 2d) lane-dense store


# ----------------------------------------------------------------------------
# Parameters
# ----------------------------------------------------------------------------

def init_params(key, d_video, d_audio, d_model):
    ks = jax.random.split(key, 3)

    def w(k, fan_in, shape):
        x = jax.random.normal(k, shape, jnp.float32) / jnp.sqrt(float(fan_in))
        return x.astype(jnp.bfloat16)        # halve the dominant weight DMA

    d2 = 2 * d_model
    # Packed small vectors, rows: [b_v, g_v, bn_v, b_a, g_a, bn_a, b_o, pad]
    vec = jnp.zeros((8, d2), jnp.float32)
    vec = vec.at[1, :d_model].set(1.0)       # gamma_v
    vec = vec.at[4, :d_model].set(1.0)       # gamma_a

    return {
        # modality projections (Conv1d k=1 == linear over features)
        "w_v": w(ks[0], d_video, (d_video, d_model)),
        "w_a": w(ks[1], d_audio, (d_audio, d_model)),
        # output projection over concatenated cross-modal features
        "w_o": w(ks[2], d2, (d2, d2)),
        # packed biases / layernorm affine params
        "vec": vec,
    }


# ----------------------------------------------------------------------------
# Wrapper
# ----------------------------------------------------------------------------

@jax.jit
def percep_processor_forward(video_inputs, audio_inputs, params):
    """only_fuse=True path of PercepProcessor.forward.

    video_inputs: (B, S, Dv)   audio_inputs: (B, S, Da)
    returns:      (B, S, 2*d_model)   (== fused_feature.transpose(1, 0);
                                       B == 1 reproduces the original module)
    """
    b_sz, s_len, d_video = video_inputs.shape
    d_audio = audio_inputs.shape[-1]
    d_model = params["w_v"].shape[1]
    d2 = 2 * d_model
    scale = 1.0 / math.sqrt(float(d_model))

    grid_spec = pltpu.PrefetchScalarGridSpec(
        num_scalar_prefetch=0,
        grid=(b_sz,),
        in_specs=[
            # activations: pipelined per window (leading dim squeezed away)
            pl.BlockSpec((None, s_len, d_video), lambda b: (b, 0, 0)),
            pl.BlockSpec((None, s_len, d_audio), lambda b: (b, 0, 0)),
            # weights: constant block index -> DMA'd once, resident in VMEM
            pl.BlockSpec((d_video, d_model), lambda b: (0, 0)),
            pl.BlockSpec((d_audio, d_model), lambda b: (0, 0)),
            pl.BlockSpec((d2, d2), lambda b: (0, 0)),
            pl.BlockSpec((8, d2), lambda b: (0, 0)),
        ],
        out_specs=pl.BlockSpec((None, s_len, d2), lambda b: (b, 0, 0)),
    )

    return pl.pallas_call(
        functools.partial(_fused_percep_kernel, d_model=d_model, scale=scale),
        out_shape=jax.ShapeDtypeStruct((b_sz, s_len, d2), jnp.float32),
        grid_spec=grid_spec,
        compiler_params=pltpu.CompilerParams(
            dimension_semantics=("parallel",),   # v7x: shard windows over 2 TCs
        ),
    )(video_inputs, audio_inputs,
      params["w_v"], params["w_a"], params["w_o"], params["vec"])


if __name__ == "__main__":
    B = 4          # independent fusion windows batched over the grid axis
    S = 8          # sequence length (frame-aligned video / audio tokens)
    D_VIDEO = 96   # Swin(embed_dim=96)-style feature width (kept small)
    D_AUDIO = 64   # VGGish-style embedding width (kept small)
    D_MODEL = 64   # fused output width 2*d = 128 -> lane-dense store

    key = jax.random.PRNGKey(0)
    k_v, k_a, k_p = jax.random.split(key, 3)
    video = jax.random.normal(k_v, (B, S, D_VIDEO), jnp.float32)
    audio = jax.random.normal(k_a, (B, S, D_AUDIO), jnp.float32)
    params = init_params(k_p, D_VIDEO, D_AUDIO, D_MODEL)

    out = percep_processor_forward(video, audio, params)
    jax.block_until_ready(out)
    assert out.shape == (B, S, 2 * D_MODEL), out.shape
    assert bool(jnp.all(jnp.isfinite(out)))
    print("KERNEL_OK")
</pallas_src>

<mosaic_0001>
module attributes {stable_mosaic.version = 11 : i64} {
  func.func @_fused_percep_kernel(%arg0: i32, %arg1: memref<1x8x96xf32, #tpu.memory_space<vmem>>, %arg2: memref<1x8x64xf32, #tpu.memory_space<vmem>>, %arg3: memref<96x64xbf16, #tpu.memory_space<vmem>>, %arg4: memref<64x64xbf16, #tpu.memory_space<vmem>>, %arg5: memref<128x128xbf16, #tpu.memory_space<vmem>>, %arg6: memref<8x128xf32, #tpu.memory_space<vmem>>, %arg7: memref<1x8x128xf32, #tpu.memory_space<vmem>>) attributes {dimension_semantics = [#tpu.dimension_semantics<parallel>], iteration_bounds = array<i64: 4>, scalar_prefetch = 0 : i64, scratch_operands = 0 : i64, tpu.core_type = #tpu.core_type<tc>, window_params = [{transform_indices = @transform_0, window_bounds = array<i64: 1, 8, 96>}, {transform_indices = @transform_1, window_bounds = array<i64: 1, 8, 64>}, {pipeline_mode = #tpu.pipeline_mode<synchronous>, transform_indices = @transform_2, window_bounds = array<i64: 96, 64>}, {pipeline_mode = #tpu.pipeline_mode<synchronous>, transform_indices = @transform_3, window_bounds = array<i64: 64, 64>}, {pipeline_mode = #tpu.pipeline_mode<synchronous>, transform_indices = @transform_4, window_bounds = array<i64: 128, 128>}, {pipeline_mode = #tpu.pipeline_mode<synchronous>, transform_indices = @transform_5, window_bounds = array<i64: 8, 128>}, {transform_indices = @transform_6, window_bounds = array<i64: 1, 8, 128>}]} {
    %c0 = arith.constant 0 : index
    %c0_0 = arith.constant 0 : index
    %0 = vector.load %arg6[%c0, %c0_0] : memref<8x128xf32, #tpu.memory_space<vmem>>, vector<1x64xf32>
    %c1 = arith.constant 1 : index
    %c0_1 = arith.constant 0 : index
    %1 = vector.load %arg6[%c1, %c0_1] : memref<8x128xf32, #tpu.memory_space<vmem>>, vector<1x64xf32>
    %c2 = arith.constant 2 : index
    %c0_2 = arith.constant 0 : index
    %2 = vector.load %arg6[%c2, %c0_2] : memref<8x128xf32, #tpu.memory_space<vmem>>, vector<1x64xf32>
    %c3 = arith.constant 3 : index
    %c0_3 = arith.constant 0 : index
    %3 = vector.load %arg6[%c3, %c0_3] : memref<8x128xf32, #tpu.memory_space<vmem>>, vector<1x64xf32>
    %c4 = arith.constant 4 : index
    %c0_4 = arith.constant 0 : index
    %4 = vector.load %arg6[%c4, %c0_4] : memref<8x128xf32, #tpu.memory_space<vmem>>, vector<1x64xf32>
    %c5 = arith.constant 5 : index
    %c0_5 = arith.constant 0 : index
    %5 = vector.load %arg6[%c5, %c0_5] : memref<8x128xf32, #tpu.memory_space<vmem>>, vector<1x64xf32>
    %c6 = arith.constant 6 : index
    %c0_6 = arith.constant 0 : index
    %6 = vector.load %arg6[%c6, %c0_6] : memref<8x128xf32, #tpu.memory_space<vmem>>, vector<1x128xf32>
    %c0_7 = arith.constant 0 : index
    %c0_8 = arith.constant 0 : index
    %c0_9 = arith.constant 0 : index
    %7 = vector.load %arg1[%c0_7, %c0_8, %c0_9] : memref<1x8x96xf32, #tpu.memory_space<vmem>>, vector<1x8x96xf32>
    %8 = vector.shape_cast %7 : vector<1x8x96xf32> to vector<8x96xf32>
    %9 = arith.truncf %8 : vector<8x96xf32> to vector<8x96xbf16>
    %c0_10 = arith.constant 0 : index
    %c0_11 = arith.constant 0 : index
    %10 = vector.load %arg3[%c0_10, %c0_11] : memref<96x64xbf16, #tpu.memory_space<vmem>>, vector<96x64xbf16>
    %cst = arith.constant dense<0.000000e+00> : vector<8x64xf32>
    %11 = tpu.matmul %9, %10, %cst {dimension_numbers = #tpu.dot_dimension_numbers<[1], [0], [0], [1], [0, 0, 1, 1], [], []>} : vector<8x96xbf16>, vector<96x64xbf16>, vector<8x64xf32> -> vector<8x64xf32>
    %12 = vector.broadcast %0 : vector<1x64xf32> to vector<8x64xf32>
    %13 = arith.addf %11, %12 : vector<8x64xf32>
    %c0_12 = arith.constant 0 : index
    %c0_13 = arith.constant 0 : index
    %c0_14 = arith.constant 0 : index
    %14 = vector.load %arg2[%c0_12, %c0_13, %c0_14] : memref<1x8x64xf32, #tpu.memory_space<vmem>>, vector<1x8x64xf32>
    %15 = vector.shape_cast %14 : vector<1x8x64xf32> to vector<8x64xf32>
    %16 = arith.truncf %15 : vector<8x64xf32> to vector<8x64xbf16>
    %c0_15 = arith.constant 0 : index
    %c0_16 = arith.constant 0 : index
    %17 = vector.load %arg4[%c0_15, %c0_16] : memref<64x64xbf16, #tpu.memory_space<vmem>>, vector<64x64xbf16>
    %cst_17 = arith.constant dense<0.000000e+00> : vector<8x64xf32>
    %18 = tpu.matmul %16, %17, %cst_17 {dimension_numbers = #tpu.dot_dimension_numbers<[1], [0], [0], [1], [0, 0, 1, 1], [], []>} : vector<8x64xbf16>, vector<64x64xbf16>, vector<8x64xf32> -> vector<8x64xf32>
    %19 = vector.broadcast %3 : vector<1x64xf32> to vector<8x64xf32>
    %20 = arith.addf %18, %19 : vector<8x64xf32>
    %cst_18 = arith.constant dense<0.000000e+00> : vector<8xf32>
    %21 = vector.multi_reduction <add>, %13, %cst_18 [1] : vector<8x64xf32> to vector<8xf32>
    %22 = vector.shape_cast %21 : vector<8xf32> to vector<8x1xf32>
    %cst_19 = arith.constant 6.400000e+01 : f32
    %23 = vector.broadcast %cst_19 : f32 to vector<8x1xf32>
    %24 = arith.divf %22, %23 : vector<8x1xf32>
    %25 = vector.broadcast %24 : vector<8x1xf32> to vector<8x64xf32>
    %26 = arith.subf %13, %25 : vector<8x64xf32>
    %27 = vector.broadcast %24 : vector<8x1xf32> to vector<8x64xf32>
    %28 = arith.subf %13, %27 : vector<8x64xf32>
    %29 = arith.mulf %26, %28 : vector<8x64xf32>
    %cst_20 = arith.constant dense<0.000000e+00> : vector<8xf32>
    %30 = vector.multi_reduction <add>, %29, %cst_20 [1] : vector<8x64xf32> to vector<8xf32>
    %31 = vector.shape_cast %30 : vector<8xf32> to vector<8x1xf32>
    %cst_21 = arith.constant 6.400000e+01 : f32
    %32 = vector.broadcast %cst_21 : f32 to vector<8x1xf32>
    %33 = arith.divf %31, %32 : vector<8x1xf32>
    %34 = vector.broadcast %24 : vector<8x1xf32> to vector<8x64xf32>
    %35 = arith.subf %13, %34 : vector<8x64xf32>
    %cst_22 = arith.constant 9.99999974E-6 : f32
    %36 = vector.broadcast %cst_22 : f32 to vector<8x1xf32>
    %37 = arith.addf %33, %36 : vector<8x1xf32>
    %38 = math.rsqrt %37 : vector<8x1xf32>
    %39 = vector.broadcast %38 : vector<8x1xf32> to vector<8x64xf32>
    %40 = arith.mulf %35, %39 : vector<8x64xf32>
    %41 = vector.broadcast %1 : vector<1x64xf32> to vector<8x64xf32>
    %42 = arith.mulf %40, %41 : vector<8x64xf32>
    %43 = vector.broadcast %2 : vector<1x64xf32> to vector<8x64xf32>
    %44 = arith.addf %42, %43 : vector<8x64xf32>
    %cst_23 = arith.constant dense<0.000000e+00> : vector<8xf32>
    %45 = vector.multi_reduction <add>, %20, %cst_23 [1] : vector<8x64xf32> to vector<8xf32>
    %46 = vector.shape_cast %45 : vector<8xf32> to vector<8x1xf32>
    %cst_24 = arith.constant 6.400000e+01 : f32
    %47 = vector.broadcast %cst_24 : f32 to vector<8x1xf32>
    %48 = arith.divf %46, %47 : vector<8x1xf32>
    %49 = vector.broadcast %48 : vector<8x1xf32> to vector<8x64xf32>
    %50 = arith.subf %20, %49 : vector<8x64xf32>
    %51 = vector.broadcast %48 : vector<8x1xf32> to vector<8x64xf32>
    %52 = arith.subf %20, %51 : vector<8x64xf32>
    %53 = arith.mulf %50, %52 : vector<8x64xf32>
    %cst_25 = arith.constant dense<0.000000e+00> : vector<8xf32>
    %54 = vector.multi_reduction <add>, %53, %cst_25 [1] : vector<8x64xf32> to vector<8xf32>
    %55 = vector.shape_cast %54 : vector<8xf32> to vector<8x1xf32>
    %cst_26 = arith.constant 6.400000e+01 : f32
    %56 = vector.broadcast %cst_26 : f32 to vector<8x1xf32>
    %57 = arith.divf %55, %56 : vector<8x1xf32>
    %58 = vector.broadcast %48 : vector<8x1xf32> to vector<8x64xf32>
    %59 = arith.subf %20, %58 : vector<8x64xf32>
    %cst_27 = arith.constant 9.99999974E-6 : f32
    %60 = vector.broadcast %cst_27 : f32 to vector<8x1xf32>
    %61 = arith.addf %57, %60 : vector<8x1xf32>
    %62 = math.rsqrt %61 : vector<8x1xf32>
    %63 = vector.broadcast %62 : vector<8x1xf32> to vector<8x64xf32>
    %64 = arith.mulf %59, %63 : vector<8x64xf32>
    %65 = vector.broadcast %4 : vector<1x64xf32> to vector<8x64xf32>
    %66 = arith.mulf %64, %65 : vector<8x64xf32>
    %67 = vector.broadcast %5 : vector<1x64xf32> to vector<8x64xf32>
    %68 = arith.addf %66, %67 : vector<8x64xf32>
    %cst_28 = arith.constant dense<0.000000e+00> : vector<8x8xf32>
    %69 = tpu.matmul %44, %68, %cst_28 {dimension_numbers = #tpu.dot_dimension_numbers<[1], [1], [0], [0], [0, 0, 1, 0], [], []>} : vector<8x64xf32>, vector<8x64xf32>, vector<8x8xf32> -> vector<8x8xf32>
    %cst_29 = arith.constant 1.250000e-01 : f32
    %70 = vector.broadcast %cst_29 : f32 to vector<8x8xf32>
    %71 = arith.mulf %69, %70 : vector<8x8xf32>
    %cst_30 = arith.constant dense<0xFF800000> : vector<8xf32>
    %72 = vector.multi_reduction <maximumf>, %71, %cst_30 [1] : vector<8x8xf32> to vector<8xf32>
    %73 = vector.shape_cast %72 : vector<8xf32> to vector<8x1xf32>
    %74 = vector.broadcast %73 : vector<8x1xf32> to vector<8x8xf32>
    %75 = arith.subf %71, %74 : vector<8x8xf32>
    %76 = math.exp %75 : vector<8x8xf32>
    %cst_31 = arith.constant dense<0.000000e+00> : vector<8xf32>
    %77 = vector.multi_reduction <add>, %76, %cst_31 [1] : vector<8x8xf32> to vector<8xf32>
    %78 = vector.shape_cast %77 : vector<8xf32> to vector<8x1xf32>
    %cst_32 = arith.constant dense<0.000000e+00> : vector<8x64xf32>
    %79 = tpu.matmul %76, %68, %cst_32 {dimension_numbers = #tpu.dot_dimension_numbers<[1], [0], [0], [1], [0, 0, 1, 1], [], []>} : vector<8x8xf32>, vector<8x64xf32>, vector<8x64xf32> -> vector<8x64xf32>
    %80 = tpu.reciprocal %78 {approx = true} : vector<8x1xf32> -> vector<8x1xf32>
    %81 = vector.broadcast %80 : vector<8x1xf32> to vector<8x64xf32>
    %82 = arith.mulf %79, %81 : vector<8x64xf32>
    %cst_33 = arith.constant dense<0.000000e+00> : vector<8x8xf32>
    %83 = tpu.matmul %68, %44, %cst_33 {dimension_numbers = #tpu.dot_dimension_numbers<[1], [1], [0], [0], [0, 0, 1, 0], [], []>} : vector<8x64xf32>, vector<8x64xf32>, vector<8x8xf32> -> vector<8x8xf32>
    %cst_34 = arith.constant 1.250000e-01 : f32
    %84 = vector.broadcast %cst_34 : f32 to vector<8x8xf32>
    %85 = arith.mulf %83, %84 : vector<8x8xf32>
    %cst_35 = arith.constant dense<0xFF800000> : vector<8xf32>
    %86 = vector.multi_reduction <maximumf>, %85, %cst_35 [1] : vector<8x8xf32> to vector<8xf32>
    %87 = vector.shape_cast %86 : vector<8xf32> to vector<8x1xf32>
    %88 = vector.broadcast %87 : vector<8x1xf32> to vector<8x8xf32>
    %89 = arith.subf %85, %88 : vector<8x8xf32>
    %90 = math.exp %89 : vector<8x8xf32>
    %cst_36 = arith.constant dense<0.000000e+00> : vector<8xf32>
    %91 = vector.multi_reduction <add>, %90, %cst_36 [1] : vector<8x8xf32> to vector<8xf32>
    %92 = vector.shape_cast %91 : vector<8xf32> to vector<8x1xf32>
    %cst_37 = arith.constant dense<0.000000e+00> : vector<8x64xf32>
    %93 = tpu.matmul %90, %44, %cst_37 {dimension_numbers = #tpu.dot_dimension_numbers<[1], [0], [0], [1], [0, 0, 1, 1], [], []>} : vector<8x8xf32>, vector<8x64xf32>, vector<8x64xf32> -> vector<8x64xf32>
    %94 = tpu.reciprocal %92 {approx = true} : vector<8x1xf32> -> vector<8x1xf32>
    %95 = vector.broadcast %94 : vector<8x1xf32> to vector<8x64xf32>
    %96 = arith.mulf %93, %95 : vector<8x64xf32>
    %c0_38 = arith.constant 0 : index
    %c0_39 = arith.constant 0 : index
    %97 = vector.load %arg5[%c0_38, %c0_39] : memref<128x128xbf16, #tpu.memory_space<vmem>>, vector<64x128xbf16>
    %c64 = arith.constant 64 : index
    %c0_40 = arith.constant 0 : index
    %98 = vector.load %arg5[%c64, %c0_40] : memref<128x128xbf16, #tpu.memory_space<vmem>>, vector<64x128xbf16>
    %99 = arith.truncf %82 : vector<8x64xf32> to vector<8x64xbf16>
    %cst_41 = arith.constant dense<0.000000e+00> : vector<8x128xf32>
    %100 = tpu.matmul %99, %97, %cst_41 {dimension_numbers = #tpu.dot_dimension_numbers<[1], [0], [0], [1], [0, 0, 1, 1], [], []>} : vector<8x64xbf16>, vector<64x128xbf16>, vector<8x128xf32> -> vector<8x128xf32>
    %101 = arith.truncf %96 : vector<8x64xf32> to vector<8x64xbf16>
    %cst_42 = arith.constant dense<0.000000e+00> : vector<8x128xf32>
    %102 = tpu.matmul %101, %98, %cst_42 {dimension_numbers = #tpu.dot_dimension_numbers<[1], [0], [0], [1], [0, 0, 1, 1], [], []>} : vector<8x64xbf16>, vector<64x128xbf16>, vector<8x128xf32> -> vector<8x128xf32>
    %103 = arith.addf %100, %102 : vector<8x128xf32>
    %104 = vector.broadcast %6 : vector<1x128xf32> to vector<8x128xf32>
    %105 = arith.addf %103, %104 : vector<8x128xf32>
    %c0_43 = arith.constant 0 : index
    %c0_44 = arith.constant 0 : index
    %c0_45 = arith.constant 0 : index
    %106 = vector.load %arg7[%c0_43, %c0_44, %c0_45] : memref<1x8x128xf32, #tpu.memory_space<vmem>>, vector<1x8x128xf32>
    %107 = vector.shape_cast %106 : vector<1x8x128xf32> to vector<8x128xf32>
    %108 = vector.shape_cast %105 : vector<8x128xf32> to vector<1x8x128xf32>
    tpu.vector_store %arg7[%c0_43, %c0_44, %c0_45], %108 {strides = array<i32>} : memref<1x8x128xf32, #tpu.memory_space<vmem>>, vector<1x8x128xf32>,
    return
  }
  func.func @transform_0(%arg0: i32) -> (i32, i32, i32) {
    %c0_i32 = arith.constant 0 : i32
    %c0_i32_0 = arith.constant 0 : i32
    %c0_i32_1 = arith.constant 0 : i32
    return %arg0, %c0_i32, %c0_i32_0 : i32, i32, i32
  }
  func.func @transform_1(%arg0: i32) -> (i32, i32, i32) {
    %c0_i32 = arith.constant 0 : i32
    %c0_i32_0 = arith.constant 0 : i32
    %c0_i32_1 = arith.constant 0 : i32
    return %arg0, %c0_i32, %c0_i32_0 : i32, i32, i32
  }
  func.func @transform_2(%arg0: i32) -> (i32, i32) {
    %c0_i32 = arith.constant 0 : i32
    %c0_i32_0 = arith.constant 0 : i32
    %c0_i32_1 = arith.constant 0 : i32
    return %c0_i32, %c0_i32_0 : i32, i32
  }
  func.func @transform_3(%arg0: i32) -> (i32, i32) {
    %c0_i32 = arith.constant 0 : i32
    %c0_i32_0 = arith.constant 0 : i32
    %c0_i32_1 = arith.constant 0 : i32
    return %c0_i32, %c0_i32_0 : i32, i32
  }
  func.func @transform_4(%arg0: i32) -> (i32, i32) {
    %c0_i32 = arith.constant 0 : i32
    %c0_i32_0 = arith.constant 0 : i32
    %c0_i32_1 = arith.constant 0 : i32
    return %c0_i32, %c0_i32_0 : i32, i32
  }
  func.func @transform_5(%arg0: i32) -> (i32, i32) {
    %c0_i32 = arith.constant 0 : i32
    %c0_i32_0 = arith.constant 0 : i32
    %c0_i32_1 = arith.constant 0 : i32
    return %c0_i32, %c0_i32_0 : i32, i32
  }
  func.func @transform_6(%arg0: i32) -> (i32, i32, i32) {
    %c0_i32 = arith.constant 0 : i32
    %c0_i32_0 = arith.constant 0 : i32
    %c0_i32_1 = arith.constant 0 : i32
    return %arg0, %c0_i32, %c0_i32_0 : i32, i32, i32
  }
}

</mosaic_0001>

<bundles_post_ra>
// kernel: percep_processor_forward.1
= control target key start
LH: loop header
LB: loop body
LE: loop exit
PB: predicated region body
PF: predicated region fallthrough
CT: control target
= control target key end

     0   :  { %s1947_s0 = inlined_call_operand.hbm [shape: f32[4,8,96], index: 0, kind: input, shape index: {}]   ;;  %s1948_s1 = inlined_call_operand.hbm [shape: f32[4,8,64], index: 1, kind: input, shape index: {}]   ;;  %s1949_s2 = inlined_call_operand.vmem [shape: bf16[96,64], index: 2, kind: input, shape index: {}]   ;;  %s1950_s3 = inlined_call_operand.hbm [shape: bf16[64,64], index: 3, kind: input, shape index: {}]   ;;  %s1951_s4 = inlined_call_operand.vmem [shape: bf16[128,128], index: 4, kind: input, shape index: {}]   ;;  %s1952_s5 = inlined_call_operand.vmem [shape: f32[8,128], index: 5, kind: input, shape index: {}]   ;;  %s1953_s6 = inlined_call_operand.hbm [shape: f32[4,8,128], index: 6, kind: output, shape index: {}]  }
   0x1   :  { %1959 = sst [smem:[#allocation15_spill]] %s1950_s3 }
   0x2   :  { %11 = vsyncpa [#allocation3], 0 }
   0x3   :  { %13 = vsyncpa [#allocation3 + $0x1], 0 }
   0x4   :  { %14 = vsyncpa [#allocation6], 0 }
   0x5   :  { %16 = vsyncpa [#allocation6 + $0x1], 0 }
   0x6   :  { %17 = vsyncpa [#allocation4], 0 }
   0x7   :  { %19 = vsyncpa [#allocation4 + $0x1], 0  ;;  %s1601_s21 = smov 0   ;;  %s1603_s22 = smov 0  }
   0x8   :  { %s1605_s23 = smov 0   ;;  %s1607_s24 = smov 0  }
   0x9 LB: > { %1960 = sst [smem:[#allocation13_spill]] %s1552_s23  ;;  %s1622_s25 = sadd.s32 4294967295, %s1556_s24   ;;  %s1556_s24 = sphi %s1607_s24, %s1980_s24   ;;  %s1552_s23 = sphi %s1605_s23, %s1977_s23   ;;  %s1548_s22 = sphi %s1603_s22, %s1979_s22   ;;  %s1544_s21 = sphi %s1601_s21, %s1978_s21  }
   0xa   : > { %s1144_s26 = sadd.s32 4294967294, %s1556_s24   ;;  %p45_p0 = scmp.ne.s32.totalorder %s1548_s22, %s1544_s21 }
   0xb   : > { %p1954_p1 = scmp.eq.s32.totalorder %s1622_s25, 0  ;;  %p185_p3 = scmp.eq.s32.totalorder %s1144_s26, 3 }
   0xc   : > { %p1145_p5 = scmp.ge.s32.totalorder %s1556_s24, 1  ;;  %p192_p7 = scmp.lt.s32.totalorder %s1556_s24, 5 }
   0xd   : > { %p1631_p4 = por %p1954_p1, %p45_p0  ;;  %p1636_p6 = por %p185_p3, %p45_p0 }
   0xe   : > { %p1641_p8 = pnand %p1145_p5, %p192_p7  ;;  %s1558_s30 = smov [#allocation7]  }
   0xf   : > { %s1961_s27 = scalar_select %p1631_p4, 1, 0 }
  0x10   : > { %s1962_s28 = scalar_select %p1636_p6, 1, 0 }
  0x11   : > { %s1963_s29 = scalar_select %p1641_p8, 1, 0 }
  0x12   : > { %s207_s7 = sshll.u32 %s1558_s30, 4  ;;  %p1308_p9 = pneg %p1641_p8  ;;  %s208_s7 = int_to_ptr.vmem [resolvable:$true] %s207_s7 }
  0x13   : > { %s1654_s9 = sadd.s32 1, %s1556_s24   ;;  %s32_s10 = sadd.s32 1, %s1552_s23 }
  0x14   : > { %p1649_p10 = pnand %p1308_p9, %p1954_p1  ;;  %s29_s11 = ssub.s32 %s1556_s24, %s1654_s9 }
  0x15   : > { %s1965_s3 = sld [smem:[#allocation15_spill]] }
  0x16   : > { %p1396_p12 = pneg %p1649_p10 }
  0x1b   : > { %s1394_s14 = scalar_lea.hbm %s1965_s3, 512 }
  0x1c   : > { %p1395_p11 = scmp.ne.s32.totalorder %s1965_s3, %s1394_s14  ;;  %p1401_p3 = scmp.lt.u32.totalorder %s1394_s14, %s1965_s3 }
  0x1e   : > { %p1397_p13 = pnand %p1396_p12, %p1395_p11 }
  0x20   : > { %p1398_p0 = pneg %p1397_p13 }
  0x22   : > { %p1403_p5 = pnand %p1401_p3, %p1398_p0 }
  0x24   : > { %1406 = shalt.err (!%p1403_p5)
}
  0x25   : > { %s1407_s19 = scalar_lea.vmem %s208_s7, 512  ;;  %p1415_p2 = scmp.lt.s32.totalorder %s208_s7, %s208_s7 }
  0x26   : > { %p1408_p7 = scmp.ne.s32.totalorder %s208_s7, %s1407_s19  ;;  %p1416_p6 = scmp.lt.s32.totalorder %s1407_s19, %s1407_s19 }
  0x28   : > { %p1410_p9 = pnand %p1408_p7, %p1396_p12  ;;  %p1417_p4 = por %p1416_p6, %p1415_p2 }
  0x2a   : > { %p1411_p1 = pneg %p1410_p9 }
  0x2c   : > { %p1418_p8 = pnand %p1417_p4, %p1411_p1 }
  0x2e   : > { %1421 = shalt.err (!%p1418_p8)
}
  0x2f   : > { %s1559_s20 = smov 64   ;;  %s1560_s26 = smov 4  }
  0x30   : > { %1311 = dma.hbm_to_vmem [thread:$0]  (!%p1649_p10), %s1965_s3, 512, %s208_s7, [#allocation6], %s1559_s20, %s1559_s20, %s1560_s26  }
  0x31   : > { %p30_p11 = scmp.eq.s32.totalorder %s29_s11, 0  ;;  %p39_p2 = scmp.ne.s32.totalorder %s1552_s23, %s1548_s22 }
  0x32   : > { %p40_p1 = scmp.eq.s32.totalorder %s1556_s24, 0  ;;  %p1324_p4 = scmp.lt.s32.totalorder %s1556_s24, 4 }
  0x33   : > { %s1680_s13 = scalar_select %p30_p11, %s1552_s23, %s32_s10  }
  0x34   : > { %p41_p6 = por %p40_p1, %p39_p2  ;;  %p1967_p8 = scmp.eq.s32.totalorder %s1622_s25, 3 }
  0x35   : > { %1966 = sst [smem:[#allocation14_spill]] %s1680_s13  ;;  %s227_s15 = sand.u32 1, %s1552_s23  }
  0x36   : > { %p1684_p12 = por %p1967_p8, %p39_p2  ;;  %s1149_s16 = sshll.u32 %s1556_s24, 7 }
  0x37   : > { %s1690_s17 = sshll.u32 %s227_s15, 3  ;;  %s1695_s7 = scalar_lea.hbm %s1947_s0, %s1149_s16 }
  0x38   : > { %s1968_s14 = scalar_select %p1684_p12, 1, 0 }
  0x39   : > { %s231_s10 = scalar_lea.vmem [#allocation2], %s1690_s17  ;;  %p1698_p10 = pnand %p1324_p4, %p41_p6 }
  0x3a   : > { %s238_s11 = sshll.u32 %s231_s10, 4  ;;  %s1707_s30 = scalar_lea.hbm %s1948_s1, %s1149_s16  ;;  %s1702_s11 = int_to_ptr.vmem [resolvable:$true] %s238_s11 }
  0x3b   : > { %s228_s12 = scalar_lea.sflag [#allocation3], %s227_s15  ;;  %s1422_s8 = scalar_lea.hbm %s1695_s7, 128 }
  0x3c   : > { %p1423_p13 = scmp.ne.s32.totalorder %s1695_s7, %s1422_s8  ;;  %p1424_p0 = pneg %p1698_p10 }
  0x3d   : > { %s1427_s3 = scalar_lea.hbm %s1947_s0, 512  ;;  %p1428_p7 = scmp.lt.u32.totalorder %s1695_s7, %s1947_s0 }
  0x3e   : > { %p1425_p3 = pnand %p1424_p0, %p1423_p13  ;;  %p1429_p9 = scmp.lt.u32.totalorder %s1427_s3, %s1422_s8 }
  0x3f   : > { %p1431_p2 = scmp.lt.u32.totalorder %s1422_s8, %s1695_s7 }
  0x40   : > { %p1426_p5 = pneg %p1425_p3  ;;  %p1430_p11 = por %p1429_p9, %p1428_p7 }
  0x42   : > { %p1432_p1 = por %p1431_p2, %p1430_p11 }
  0x44   : > { %p1433_p4 = pnand %p1432_p1, %p1426_p5 }
  0x46   : > { %1436 = shalt.err (!%p1433_p4)
}
  0x47   : > { %s1437_s15 = scalar_lea.vmem %s1702_s11, 128  ;;  %s1561_s16 = smov [#allocation2]  }
  0x48   : > { %p1438_p6 = scmp.ne.s32.totalorder %s1702_s11, %s1437_s15  ;;  %s1442_s20 = sshll.u32 %s1561_s16, 4  ;;  %s1443_s20 = int_to_ptr.vmem [resolvable:$false] %s1442_s20 }
  0x49   : > { %s1444_s23 = scalar_lea.vmem %s1443_s20, 256  ;;  %p1445_p3 = scmp.lt.s32.totalorder %s1702_s11, %s1443_s20 }
  0x4a   : > { %p1440_p8 = pnand %p1438_p6, %p1424_p0  ;;  %p1446_p7 = scmp.lt.s32.totalorder %s1444_s23, %s1437_s15 }
  0x4c   : > { %p1441_p13 = pneg %p1440_p8  ;;  %p1447_p9 = por %p1446_p7, %p1445_p3 }
  0x4e   : > { %p1448_p11 = pnand %p1447_p9, %p1441_p13 }
  0x50   : > { %1451 = shalt.err (!%p1448_p11)
}
  0x51   : > { %1315 = dma.hbm_to_vmem [thread:$0]  (!%p1698_p10), %s1695_s7, 128, %s1702_s11, %s228_s12  }
  0x52   : > { %s245_s3 = sand.u32 1, %s1556_s24   ;;  %s249_s13 = scalar_lea.vmem [#allocation5], %s1690_s17 }
  0x53   : > { %s256_s26 = sshll.u32 %s249_s13, 4  ;;  %s246_s8 = scalar_lea.sflag [#allocation6], %s245_s3  ;;  %s257_s26 = int_to_ptr.vmem [resolvable:$true] %s256_s26 }
  0x54   : > { %s1452_s18 = scalar_lea.hbm %s1707_s30, 128  ;;  %s1457_s16 = scalar_lea.hbm %s1948_s1, 512 }
  0x55   : > { %p1453_p5 = scmp.ne.s32.totalorder %s1707_s30, %s1452_s18  ;;  %p1458_p4 = scmp.lt.u32.totalorder %s1707_s30, %s1948_s1 }
  0x56   : > { %p1459_p6 = scmp.lt.u32.totalorder %s1457_s16, %s1452_s18  ;;  %p1461_p13 = scmp.lt.u32.totalorder %s1452_s18, %s1707_s30 }
  0x57   : > { %p1455_p2 = pnand %p1453_p5, %p1424_p0 }
  0x58   : > { %p1460_p8 = por %p1459_p6, %p1458_p4 }
  0x59   : > { %p1456_p1 = pneg %p1455_p2 }
  0x5a   : > { %p1462_p3 = por %p1461_p13, %p1460_p8 }
  0x5c   : > { %p1463_p7 = pnand %p1462_p3, %p1456_p1 }
  0x5e   : > { %1466 = shalt.err (!%p1463_p7)
}
  0x5f   : > { %s1467_s17 = scalar_lea.vmem %s257_s26, 128  ;;  %s1562_s7 = smov [#allocation5]  }
  0x60   : > { %p1468_p9 = scmp.ne.s32.totalorder %s257_s26, %s1467_s17  ;;  %s1472_s11 = sshll.u32 %s1562_s7, 4  ;;  %s1473_s11 = int_to_ptr.vmem [resolvable:$false] %s1472_s11 }
  0x61   : > { %s1474_s12 = scalar_lea.vmem %s1473_s11, 256  ;;  %p1475_p2 = scmp.lt.s32.totalorder %s257_s26, %s1473_s11 }
  0x62   : > { %p1470_p11 = pnand %p1468_p9, %p1424_p0  ;;  %p1476_p12 = scmp.lt.s32.totalorder %s1474_s12, %s1467_s17 }
  0x64   : > { %p1471_p5 = pneg %p1470_p11  ;;  %p1477_p4 = por %p1476_p12, %p1475_p2 }
  0x66   : > { %p1478_p6 = pnand %p1477_p4, %p1471_p5 }
  0x68   : > { %1481 = shalt.err (!%p1478_p6)
}
  0x69   : > { %1318 = dma.hbm_to_vmem [thread:$0]  (!%p1698_p10), %s1707_s30, 128, %s257_s26, %s246_s8  }
  0x6a   : > { %p1970_p1 = scmp.ne.s32.totalorder %s1963_s29, 0 }
  0x6b   : > { %s1758_s3 = sand.u32 (!%p1970_p1), 1, %s1548_s22   ;;  %p1971_p12 = scmp.ne.s32.totalorder (!%p1970_p1), %s1961_s27, 0 }
  0x6c   : > { %265 = sbr.rel (%p1970_p1) target bundleno = 1497 (0x5d9), region = 44  ;;  %s1761_s13 = sshll.u32 (!%p1970_p1), %s1758_s3, 3 }
  0x6d   : > { %s268_s18 = scalar_lea.sflag (!%p1970_p1), [#allocation3], %s1758_s3  ;;  %s271_s10 = scalar_lea.vmem (!%p1970_p1), [#allocation2], %s1761_s13 }
  0x73   : > { %1527 = dma.done.wait (%p1971_p12), %s268_s18, 128  }
  0x74   : > { %1529 = vsyncadd (%p1971_p12), %s268_s18, 4294967168  ;;  %s276_s29 = sand.u32 1, %s1622_s25   ;;  %s280_s30 = scalar_lea.vmem [#allocation5], %s1761_s13 }
  0x75   : > { %s277_s19 = scalar_lea.sflag [#allocation6], %s276_s29 }
  0x76   : > { %1531 = dma.done.wait (%p1971_p12), %s277_s19, 128  }
  0x77   : > { %1533 = vsyncadd (%p1971_p12), %s277_s19, 4294967168  ;;  %p1972_p10 = scmp.eq.s32.totalorder %s1622_s25, 0 }
  0x79   : > { %1535 = dma.done.wait (%p1972_p10), [#allocation6], 512   ;;  %p1973_p0 = pmov %p1972_p10 }
  0x7a   : > { %v1563_v0 = vmov 0.0   ;;  %vm1564_vm0 = vmmov 0   ;;  %v1364_v1 = vld [vmem:[%s1949_s2] sm:$0xff]   ;;  %v1366_v3 = vld [vmem:[%s1949_s2 + $0x8] sm:$0xff]   ;;  %v1368_v5 = vld [vmem:[%s1949_s2 + $0x10] sm:$0xff]   ;;  %vm462_vm1 = vcmask 523264  }
  0x7b   : > { %1537 = vsyncadd (%p1973_p0), [#allocation6], 4294966784  ;;  %1226 = vmatprep.subr.bf16.mxu0 %v1563_v0  ;;  %1242 = vmatprep.subr.bf16.mxu1 %v1563_v0  ;;  %v1365_v2 = vld [vmem:[#allocation7] sm:$0xff]   ;;  %v1367_v4 = vld [vmem:[#allocation7 + $0x8] sm:$0xff]   ;;  %vm380_vm2 = vcmask 785408   ;;  %vm630_vm3 = vcmask 64512  }
  0x7c   : > { %1250 = vmatprep.mubr.msk.bf16.mxu1 %vm1564_vm0, %v1563_v0  ;;  %1238 = vmatprep.mubr.msk.bf16.mxu0 %vm1564_vm0, %v1563_v0  ;;  %v1369_v6 = vld [vmem:[#allocation7 + $0x10] sm:$0xff]   ;;  %v1370_v7 = vld [vmem:[%s1949_s2 + $0x18] sm:$0xff]   ;;  %v1372_v10 = vld [vmem:[%s1949_s2 + $0x20] sm:$0xff]   ;;  %s1193_s12 = sshll.u32 %s1622_s25, 7  ;;  %s317_s18 = scalar_lea.vmem [#allocation8], %s1761_s13 }
  0x7d   : > { %1227 = vmatpush3.bf16.msra.mxu0 %v1364_v1  ;;  %1243 = vmatpush3.bf16.msra.mxu1 %v1365_v2  ;;  %v1371_v8 = vld [vmem:[#allocation7 + $0x18] sm:$0xff]   ;;  %v1373_v12 = vld [vmem:[%s1949_s2 + $0x28] sm:$0xff]   ;;  %v1165_v15 = vld [vmem:[%s1952_s5 + $0x3] ss:$0 sm:$0xff]  ;;  %s1042_s29 = sshll.u32 %s317_s18, 4  ;;  %s1029_s27 = scalar_lea.sflag [#allocation4], %s1758_s3  ;;  %s1906_s29 = int_to_ptr.vmem [resolvable:$true] %s1042_s29 }
  0x7e   : > { %1228 = vmatprep.subr.bf16.mxu0 %v1563_v0  ;;  %1244 = vmatprep.subr.bf16.mxu1 %v1563_v0  ;;  %v424_v9 = vld [vmem:[%s280_s30] sm:$0xff]  ;;  %v326_v13 = vld [vmem:[%s271_s10] sm:$0xff]  ;;  %s1904_s30 = scalar_lea.hbm %s1953_s6, %s1193_s12  ;;  %s1482_s25 = scalar_lea.vmem %s1906_s29, 128 }
  0x7f   : > { %v425_v11 = vpack.c.bf16 %v424_v9, %v424_v9  ;;  %v327_v14 = vpack.c.bf16 %v326_v13, %v326_v13  ;;  %v1157_v22 = vld [vmem:[%s1952_s5] ss:$0 sm:$0xff]  ;;  %v1173_v46 = vld [vmem:[%s1952_s5 + $0x4] ss:$0 sm:$0xff]  ;;  %v1174_v48 = vld [vmem:[%s1952_s5 + $0x5] ss:$0 sm:$0xff]  ;;  %p1483_p8 = scmp.ne.s32.totalorder %s1906_s29, %s1482_s25 }
  0x80   : > { %v1171_v52 = vld [vmem:[%s1952_s5 + $0x1] ss:$0 sm:$0xff]  ;;  %v1172_v54 = vld [vmem:[%s1952_s5 + $0x2] ss:$0 sm:$0xff]  ;;  %p1974_p13 = scmp.ne.s32.totalorder %s1968_s14, 0  ;;  %s1565_s13 = smov [#allocation8]  }
  0x81   : > { %1229 = vmatpush3.bf16.msra.mxu0 %v1366_v3  ;;  %1245 = vmatpush3.bf16.msra.mxu1 %v1367_v4  ;;  %v1375_v13 = vld [vmem:[%s1951_s4 + $0x20] sm:$0xff]   ;;  %s1486_s26 = sshll.u32 %s1565_s13, 4  ;;  %s1487_s26 = int_to_ptr.vmem [resolvable:$false] %s1486_s26 }
  0x82   : > { %1230 = vmatprep.subr.bf16.mxu0 %v1563_v0  ;;  %1246 = vmatprep.subr.bf16.mxu1 %v1563_v0  ;;  %p1484_p3 = pnand %p1483_p8, %p1974_p13  ;;  %s1488_s8 = scalar_lea.vmem %s1487_s26, 256 }
  0x83   : > { %p1489_p9 = scmp.lt.s32.totalorder %s1906_s29, %s1487_s26  ;;  %p1490_p11 = scmp.lt.s32.totalorder %s1488_s8, %s1482_s25 }
  0x84   : > { %p1485_p7 = pneg %p1484_p3 }
  0x85   : > { %1231 = vmatpush3.bf16.msra.mxu0 %v1368_v5  ;;  %1247 = vmatpush3.bf16.msra.mxu1 %v1369_v6  ;;  %p1491_p5 = por %p1490_p11, %p1489_p9 }
  0x86   : > { %1232 = vmatprep.subr.bf16.mxu0 %v1563_v0  ;;  %1248 = vmatprep.subr.bf16.mxu1 %v1563_v0 }
  0x87   : > { %p1492_p2 = pnand %p1491_p5, %p1485_p7 }
  0x89   : > { %1233 = vmatpush3.bf16.msra.mxu0 %v1370_v7  ;;  %1249 = vmatpush3.bf16.msra.mxu1 %v1371_v8 }
  0x8a   : > { %1234 = vmatprep.subr.bf16.mxu0 %v1563_v0  ;;  %1254 = vmatprep.subr.mxu1 %v1563_v0 }
  0x8c   : > { %1251 = vmatmul.mubr.msk.bf16.vlgmr.msra.gmra.mrb[0].mxu1 %vm462_vm1, %v425_v11 }
  0x8d   : > { %1235 = vmatpush3.bf16.msra.mxu0 %v1372_v10  ;;  %1256 = vmatprep.mubr.msk.f32.mxu1 %vm1564_vm0, %v1563_v0 }
  0x8e   : > { %1236 = vmatprep.subr.bf16.mxu0 %v1563_v0 }
  0x91   : > { %1237 = vmatpush3.bf16.msra.mxu0 %v1373_v12  ;;  %v1374_v12 = vld [vmem:[%s1951_s4] sm:$0xff]  }
  0x92   : > { %1264 = vmatprep.subr.mxu0 %v1563_v0 }
  0x94   : > { %1239 = vmatmul.mubr.msk.bf16.vlgmr.msra.gmra.mrb[0].mxu0 %vm380_vm2, %v327_v14  ;;  %v1376_v14 = vld [vmem:[%s1951_s4 + $0x8] sm:$0xff]  }
  0x95   : > { %1266 = vmatprep.mubr.msk.f32.mxu0 %vm1564_vm0, %v1563_v0 }
 0x15f   : > { %v500_v16 = vpop.f32.mrb[0].mxu1 }
 0x160   : > { %v501_v17 = vadd.f32 %v1165_v15, %v500_v16  ;;  %v1252_v18 = vpop.f32.mrb[1].mxu1  ;;  %v1377_v15 = vld [vmem:[%s1951_s4 + $0x28] sm:$0xff]   ;;  %v1378_v16 = vld [vmem:[%s1951_s4 + $0x10] sm:$0xff]  }
 0x161   : > { %v503_v19 = vpop.f32.mrb[2].mxu1  ;;  %v1380_v18 = vld [vmem:[%s1951_s4 + $0x18] sm:$0xff]  }
 0x162   : > { %v1253_v20 = vpop.f32.mrb[3].mxu1  ;;  %v530_v21 = vsel %vm462_vm1, %v501_v17, 0.0  ;;  %v1381_v19 = vld [vmem:[%s1951_s4 + $0x38] sm:$0xff]  }
 0x163   : > { %531 = vadd.xlane.f32.xlu0 %v530_v21 }
 0x167   : > { %v418_v23 = vpop.f32.mrb[0].mxu0 }
 0x168   : > { %v419_v24 = vadd.f32 %v1157_v22, %v418_v23  ;;  %v1240_v25 = vpop.f32.mrb[1].mxu0 }
 0x169   : > { %v421_v26 = vpop.f32.mrb[2].mxu0 }
 0x16a   : > { %v1241_v27 = vpop.f32.mrb[3].mxu0  ;;  %v506_v28 = vsel %vm462_vm1, %v419_v24, 0.0 }
 0x16b   : > { %507 = vadd.xlane.f32.xlu0 %v506_v28 }
 0x1f0   : > { %v532_v29 = vpop.xlane.xlu0 %531 }
 0x1f1   : > { %v533_v30 = vmul.f32 0.015625, %v532_v29 }
 0x1f3   : > { %v534_v31 = vsub.f32 %v501_v17, %v533_v30  ;;  %v1379_v17 = vld [vmem:[%s1951_s4 + $0x30] sm:$0xff]  }
 0x1f5   : > { %v535_v32 = vmul.f32 %v534_v31, %v534_v31 }
 0x1f7   : > { %v536_v33 = vsel %vm462_vm1, %v535_v32, 0.0 }
 0x1f8   : > { %v508_v34 = vpop.xlane.xlu0 %507  ;;  %537 = vadd.xlane.f32.xlu1 %v536_v33 }
 0x1f9   : > { %v510_v35 = vmul.f32 0.015625, %v508_v34 }
 0x1fb   : > { %v511_v36 = vsub.f32 %v419_v24, %v510_v35  ;;  %v1191_v35 = vld [vmem:[%s1952_s5 + $0x6] ss:$0 sm:$0xff] }
 0x1fd   : > { %v512_v37 = vmul.f32 %v511_v36, %v511_v36 }
 0x1ff   : > { %v513_v38 = vsel %vm462_vm1, %v512_v37, 0.0 }
 0x200   : > { %514 = vadd.xlane.f32.xlu1 %v513_v38 }
 0x285   : > { %v538_v39 = vpop.xlane.xlu1 %537 }
 0x286   : > { %v539_v40 = vmul.f32 0.015625, %v538_v39 }
 0x288   : > { %v540_v41 = vadd.f32 1e-05, %v539_v40 }
 0x28a   : > { %1382 = vrsqrt.f32 %v540_v41 }
 0x28d   : > { %v515_v42 = vpop.xlane.xlu1 %514 }
 0x28e   : > { %v516_v43 = vmul.f32 0.015625, %v515_v42 }
 0x290   : > { %v517_v44 = vadd.f32 1e-05, %v516_v43 }
 0x292   : > { %1384 = vrsqrt.f32 %v517_v44 }
 0x294   : > { %v1383_v45 = vpop.eup %1382 }
 0x295   : > { %v542_v47 = vmul.f32 %v1383_v45, %v534_v31 }
 0x297   : > { %v547_v49 = vmul.f32 %v1173_v46, %v542_v47 }
 0x299   : > { %v552_v50 = vadd.f32 %v1174_v48, %v547_v49 }
 0x29b   : > { %1255 = vmatpush3.xpose.msk.msra.mxu1 %vm462_vm1, %v552_v50 }
 0x29c   : > { %v1385_v51 = vpop.eup %1384  ;;  %1259 = vmatprep.subr.mxu1 %v1563_v0 }
 0x29d   : > { %v519_v53 = vmul.f32 %v1385_v51, %v511_v36 }
 0x29f   : > { %v524_v55 = vmul.f32 %v1171_v52, %v519_v53 }
 0x2a1   : > { %v529_v56 = vadd.f32 %v1172_v54, %v524_v55 }
 0x2a3   : > { %1257 = vmatmul.mubr.msk.f32.vlgmr.msra.gmra.mrb[4].mxu1 %vm462_vm1, %v529_v56  ;;  %1265 = vmatpush3.xpose.msk.msra.mxu0 %vm462_vm1, %v529_v56 }
 0x2a4   : > { %1260 = vmatpush3.msra.mxu1 %v552_v50  ;;  %1261 = vmatprep.mubr.msk.f32.mxu1 %vm1564_vm0, %v1563_v0 }
 0x2a5   : > { %1269 = vmatprep.subr.mxu1 %v1563_v0  ;;  %1274 = vmatprep.subr.bf16.mxu0 %v1563_v0 }
 0x2a6   : > { %1267 = vmatmul.mubr.msk.f32.vlgmr.msra.gmra.mrb[4].mxu0 %vm462_vm1, %v552_v50 }
 0x2a7   : > { %1282 = vmatprep.mubr.msk.bf16.mxu0 %vm1564_vm0, %v1563_v0  ;;  %1275 = vmatpush3.bf16.msra.mxu0 %v1375_v13 }
 0x2a8   : > { %1276 = vmatprep.subr.bf16.mxu0 %v1563_v0 }
 0x2ab   : > { %1277 = vmatpush3.bf16.msra.mxu0 %v1377_v15 }
 0x2ac   : > { %1278 = vmatprep.subr.bf16.mxu0 %v1563_v0 }
 0x2af   : > { %1279 = vmatpush3.bf16.msra.mxu0 %v1379_v17 }
 0x2b0   : > { %1280 = vmatprep.subr.bf16.mxu0 %v1563_v0 }
 0x2b3   : > { %1281 = vmatpush3.bf16.msra.mxu0 %v1381_v19 }
 0x376   : > { %v625_v57 = vpop.f32.mrb[4].mxu1 }
 0x377   : > { %v629_v58 = vmul.f32 0.125, %v625_v57  ;;  %v1258_v59 = vpop.f32.mrb[5].mxu1 }
 0x379   : > { %v781_v60 = vpop.f32.mrb[4].mxu0  ;;  %v631_v61 = vsel %vm630_vm3, %v629_v58, -inf }
 0x37a   : > { %v785_v62 = vmul.f32 0.125, %v781_v60  ;;  %v1268_v63 = vpop.f32.mrb[5].mxu0  ;;  %632 = vmax.xlane.f32.xlu0 %v631_v61 }
 0x37c   : > { %v786_v1 = vsel %vm630_vm3, %v785_v62, -inf }
 0x37d   : > { %787 = vmax.xlane.f32.xlu1 %v786_v1 }
 0x407   : > { %v633_v2 = vpop.xlane.xlu0 %632 }
 0x408   : > { %v634_v3 = vsub.f32 %v629_v58, %v633_v2 }
 0x40a   : > { %v635_v4 = vmul.f32 1.442695, %v634_v3  ;;  %v788_v5 = vpop.xlane.xlu1 %787 }
 0x40b   : > { %v789_v6 = vsub.f32 %v785_v62, %v788_v5 }
 0x40c   : > { %1386 = vpow2.f32 %v635_v4 }
 0x40d   : > { %v790_v7 = vmul.f32 1.442695, %v789_v6 }
 0x40f   : > { %1388 = vpow2.f32 %v790_v7 }
 0x416   : > { %v1387_v8 = vpop.eup %1386 }
 0x417   : > { %1262 = vmatmul.mubr.msk.f32.vlgmr.msra.gmra.mrb[6].mxu1 %vm630_vm3, %v1387_v8  ;;  %v637_v9 = vsel %vm630_vm3, %v1387_v8, 0.0 }
 0x418   : > { %1270 = vmatpush3.msra.mxu1 %v529_v56  ;;  %638 = vadd.xlane.f32.xlu0 %v637_v9 }
 0x419   : > { %v1389_v10 = vpop.eup %1388  ;;  %1271 = vmatprep.mubr.msk.f32.mxu1 %vm1564_vm0, %v1563_v0  ;;  %1286 = vmatprep.subr.bf16.mxu1 %v1563_v0 }
 0x41a   : > { %v792_v11 = vsel %vm630_vm3, %v1389_v10, 0.0 }
 0x41b   : > { %793 = vadd.xlane.f32.xlu1 %v792_v11  ;;  %1272 = vmatmul.mubr.msk.f32.vlgmr.msra.gmra.mrb[8].mxu1 %vm630_vm3, %v1389_v10 }
 0x41c   : > { %1294 = vmatprep.mubr.msk.bf16.mxu1 %vm1564_vm0, %v1563_v0  ;;  %1287 = vmatpush3.bf16.msra.mxu1 %v1374_v12 }
 0x41d   : > { %1288 = vmatprep.subr.bf16.mxu1 %v1563_v0 }
 0x420   : > { %1289 = vmatpush3.bf16.msra.mxu1 %v1376_v14 }
 0x421   : > { %1290 = vmatprep.subr.bf16.mxu1 %v1563_v0 }
 0x424   : > { %1291 = vmatpush3.bf16.msra.mxu1 %v1378_v16 }
 0x425   : > { %1292 = vmatprep.subr.bf16.mxu1 %v1563_v0 }
 0x428   : > { %1293 = vmatpush3.bf16.msra.mxu1 %v1380_v18 }
 0x4a5   : > { %v639_v20 = vpop.xlane.xlu0 %638 }
 0x4a6   : > { %1390 = vrcp.f32 %v639_v20 }
 0x4a8   : > { %v794_v21 = vpop.xlane.xlu1 %793 }
 0x4a9   : > { %1392 = vrcp.f32 %v794_v21 }
 0x4b0   : > { %v1391_v22 = vpop.eup %1390 }
 0x4b3   : > { %v1393_v27 = vpop.eup %1392 }
 0x4ea   : > { %v709_v23 = vpop.f32.mrb[6].mxu1 }
 0x4eb   : > { %v714_v24 = vmul.f32 %v1391_v22, %v709_v23  ;;  %v1263_v25 = vpop.f32.mrb[7].mxu1 }
 0x4ed   : > { %v886_v26 = vpack.c.bf16 %v714_v24, %v714_v24 }
 0x4ee   : > { %v864_v28 = vpop.f32.mrb[8].mxu1 }
 0x4ef   : > { %v869_v29 = vmul.f32 %v1393_v27, %v864_v28  ;;  %v1273_v0 = vpop.f32.mrb[9].mxu1  ;;  %1295 = vmatmul.mubr.msk.bf16.vlgmr.msra.gmra.mrb[12].mxu1 %vm462_vm1, %v886_v26 }
 0x4f1   : > { %v887_v30 = vpack.c.bf16 %v869_v29, %v869_v29 }
 0x4f3   : > { %1283 = vmatmul.mubr.msk.bf16.vlgmr.msra.gmra.mrb[8].mxu0 %vm462_vm1, %v887_v30 }
 0x5c2   : > { %v1016_v31 = vpop.f32.mrb[12].mxu1 }
 0x5c3   : > { %v1296_v32 = vpop.f32.mrb[13].mxu1 }
 0x5c4   : > { %v1019_v33 = vpop.f32.mrb[14].mxu1 }
 0x5c5   : > { %v1297_v34 = vpop.f32.mrb[15].mxu1 }
 0x5c6   : > { %v949_v36 = vpop.f32.mrb[8].mxu0 }
 0x5c7   : > { %v1017_v37 = vadd.f32 %v1016_v31, %v949_v36  ;;  %v1284_v38 = vpop.f32.mrb[9].mxu0 }
 0x5c8   : > { %v952_v39 = vpop.f32.mrb[10].mxu0 }
 0x5c9   : > { %v1026_v40 = vadd.f32 %v1191_v35, %v1017_v37  ;;  %v1285_v41 = vpop.f32.mrb[11].mxu0 }
 0x5cb   : > { %1027 = vst [vmem:[%s317_s18] sm:$0xff] %v1026_v40 }
 0x5cc   : > { %1495 = shalt.err (!%p1492_p2)
}
 0x5cd   : > { %s1496_s3 = scalar_lea.hbm %s1904_s30, 128  ;;  %s1500_s20 = scalar_lea.hbm %s1953_s6, 512 }
 0x5ce   : > { %p1497_p4 = scmp.ne.s32.totalorder %s1904_s30, %s1496_s3  ;;  %p1501_p12 = scmp.lt.u32.totalorder %s1904_s30, %s1953_s6 }
 0x5cf   : > { %p1502_p10 = scmp.lt.u32.totalorder %s1500_s20, %s1496_s3  ;;  %p1504_p8 = scmp.lt.u32.totalorder %s1496_s3, %s1904_s30 }
 0x5d0   : > { %p1498_p6 = pnand %p1497_p4, %p1974_p13 }
 0x5d1   : > { %p1503_p0 = por %p1502_p10, %p1501_p12 }
 0x5d2   : > { %p1499_p1 = pneg %p1498_p6 }
 0x5d3   : > { %p1505_p3 = por %p1504_p8, %p1503_p0 }
 0x5d5   : > { %p1506_p7 = pnand %p1505_p3, %p1499_p1 }
 0x5d7   : > { %1509 = shalt.err (!%p1506_p7)
}
 0x5d8   : > { %1306 = dma.vmem_to_hbm [thread:$0]  (%p1974_p13), %s1906_s29, 128, %s1904_s30, %s1029_s27  }
 0x5d9 PF: > { %p1326_p9 = scmp.ge.s32.totalorder %s1556_s24, 2  ;;  %s1054_s7 = sand.u32 1, %s1544_s21  }
 0x5da   : > { %p1975_p11 = scmp.ne.s32.totalorder %s1962_s28, 0  ;;  %s1055_s11 = scalar_lea.sflag [#allocation4], %s1054_s7 }
 0x5dc   : > { %p1320_p5 = pnand %p1326_p9, %p1975_p11 }
 0x5de   : > { %1539 = dma.done.wait (!%p1320_p5), %s1055_s11, 128  }
 0x5df   : > { %1541 = vsyncadd (!%p1320_p5), %s1055_s11, 4294967168  ;;  %s1976_s12 = sld [smem:[#allocation13_spill]]  ;;  %s1977_s23 = sld [smem:[#allocation14_spill]] }
 0x5e0   : > { %p22_p2 = scmp.ge.s32.totalorder %s1654_s9, 6   ;;  %s1978_s21 = smov %s1548_s22 }
 0x5e1   : > { %s1980_s24 = smov %s1654_s9 }
 0x5e2   :  { %24 = sbr.rel (!%p22_p2) target bundleno = 9 (0x9), region = 106 }
 0x5e5   : > { %s1979_s22 = smov %s1976_s12 }
 0x5e9   :  { %1060 = vsyncpa [#allocation3], 1 }
 0x5ea   :  { %1062 = vsyncpa [#allocation3 + $0x1], 1 }
 0x5eb   :  { %1063 = vsyncpa [#allocation6], 1 }
 0x5ec   :  { %1065 = vsyncpa [#allocation6 + $0x1], 1 }
 0x5ed   :  { %1066 = vsyncpa [#allocation4], 1 }
 0x5ee   :  { %1068 = vsyncpa [#allocation4 + $0x1], 1 }

</bundles_post_ra>
